<compile_context>
chip_gen: v5e
topology: v5e:2x2
jax: 0.10.0
libtpu: 0.0.40
codegen_flags: <defaults>
</compile_context>

<pallas_src>
import numpy as np
import jax
import jax.numpy as jnp
from jax.experimental import pallas as pl
from jax.experimental.pallas import tpu as pltpu

OBS_DIM = 32
HIDDEN = 32
ACTION_DIM = 4
MAX_ACTION_RANGE = 1.0

X_ROWS = OBS_DIM + ACTION_DIM            # packed input rows (obs^T over eps^T)
W_T_ROWS = 2 * HIDDEN + 2 * ACTION_DIM   # packed transposed-weight rows
W_T_COLS = max(OBS_DIM, HIDDEN)          # packed transposed-weight cols
OUT_ROWS = ACTION_DIM + 1                # packed output rows (action^T over log_prob)

LOG_2PI = float(np.log(2.0 * np.pi))
LOG_2 = float(np.log(2.0))
# NOTE: PyTorch Policy._tanh_squash_output adds log(max_action_range) ONCE (outside the
# per-dim sum); we match that verbatim (irrelevant at max_action_range == 1.0).
LOG_MAX_RANGE = float(np.log(MAX_ACTION_RANGE))
# log_prob = sum_i(-0.5*eps_i^2 - log_sigma_i + 2*(|a_i| + log1p(exp(-2|a_i|)))) + LOGP_CONST
LOGP_CONST = -0.5 * ACTION_DIM * LOG_2PI - LOG_MAX_RANGE - 2.0 * ACTION_DIM * LOG_2


def policy_kernel(x_ref, w_ref, b_ref, out_ref):
    # ---- static slices of packed parameter blobs (free ref views) ----
    w1t = w_ref[0:HIDDEN, 0:OBS_DIM]                                   # (H, OBS) bf16
    w2t = w_ref[HIDDEN:2 * HIDDEN, 0:HIDDEN]                           # (H, H)   bf16
    wht = w_ref[2 * HIDDEN:2 * HIDDEN + 2 * ACTION_DIM, 0:HIDDEN]      # (2A, H)  bf16
    b1 = b_ref[0:HIDDEN, :]                                            # (H, 1) f32
    b2 = b_ref[HIDDEN:2 * HIDDEN, :]
    bh = b_ref[2 * HIDDEN:2 * HIDDEN + 2 * ACTION_DIM, :]              # (2A, 1) f32

    # ---- packed batch-on-lanes input slab ----
    obs = x_ref[0:OBS_DIM, :].astype(jnp.bfloat16)                     # (OBS, TB)
    eps = x_ref[OBS_DIM:OBS_DIM + ACTION_DIM, :]                       # (A, TB) f32

    # ---- policy MLP: W^T @ x, bf16 MXU operands, f32 accumulate / elementwise ----
    h1 = jnp.maximum(jnp.dot(w1t, obs, preferred_element_type=jnp.float32) + b1, 0.0)
    h2 = jnp.maximum(jnp.dot(w2t, h1.astype(jnp.bfloat16),
                             preferred_element_type=jnp.float32) + b2, 0.0)
    head = jnp.dot(wht, h2.astype(jnp.bfloat16),
                   preferred_element_type=jnp.float32) + bh             # (2A, TB)

    mu = head[0:ACTION_DIM, :]
    log_sigma = head[ACTION_DIM:2 * ACTION_DIM, :]
    sigma = jnp.exp(log_sigma)

    # ---- rsample ----
    a_pre = mu + sigma * eps                                            # (A, TB)

    # ---- tanh squash (shared exp) ----
    abs_a = jnp.abs(a_pre)
    t = jnp.exp(-2.0 * abs_a)                                           # one EUP exp / elem
    tanh_mag = (1.0 - t) * pl.reciprocal(1.0 + t, approx=True)          # EUP reciprocal
    tanh_a = jnp.where(a_pre >= 0.0, tanh_mag, -tanh_mag)
    action = MAX_ACTION_RANGE * tanh_a

    # ---- Normal log-prob + squash correction, single sublane reduction ----
    # log(2) - a - softplus(-2a) == log(2) - |a| - log1p(t); constants folded in LOGP_CONST.
    per_elem = -0.5 * eps * eps - log_sigma + 2.0 * (abs_a + jnp.log1p(t))
    log_prob = jnp.sum(per_elem, axis=0, keepdims=True) + LOGP_CONST    # (1, TB)

    out_ref[0:ACTION_DIM, :] = action.astype(out_ref.dtype)
    out_ref[ACTION_DIM:ACTION_DIM + 1, :] = log_prob.astype(out_ref.dtype)


def _round_up(x, m):
    return ((x + m - 1) // m) * m


def pack_params(params):
    """Pack the 8 per-layer tensors into one transposed bf16 weight blob + one f32 bias blob."""
    w_blob = jnp.zeros((W_T_ROWS, W_T_COLS), jnp.bfloat16)
    w_blob = w_blob.at[0:HIDDEN, 0:OBS_DIM].set(params["w1"].T.astype(jnp.bfloat16))
    w_blob = w_blob.at[HIDDEN:2 * HIDDEN, 0:HIDDEN].set(params["w2"].T.astype(jnp.bfloat16))
    w_blob = w_blob.at[2 * HIDDEN:2 * HIDDEN + ACTION_DIM, 0:HIDDEN].set(
        params["wmu"].T.astype(jnp.bfloat16))
    w_blob = w_blob.at[2 * HIDDEN + ACTION_DIM:2 * HIDDEN + 2 * ACTION_DIM, 0:HIDDEN].set(
        params["wls"].T.astype(jnp.bfloat16))

    b_blob = jnp.zeros((W_T_ROWS, 1), jnp.float32)
    b_blob = b_blob.at[0:HIDDEN, 0].set(params["b1"].reshape(-1))
    b_blob = b_blob.at[HIDDEN:2 * HIDDEN, 0].set(params["b2"].reshape(-1))
    b_blob = b_blob.at[2 * HIDDEN:2 * HIDDEN + ACTION_DIM, 0].set(params["bmu"].reshape(-1))
    b_blob = b_blob.at[2 * HIDDEN + ACTION_DIM:, 0].set(params["bls"].reshape(-1))
    return w_blob, b_blob


def policy_forward(obs, w_blob, b_blob, eps, *, block_b=2048):
    """obs: (B, OBS_DIM), eps: (B, ACTION_DIM). Returns action (B, A), log_prob (B,)."""
    B = obs.shape[0]

    # Batch lives on the 128-lane axis -> pad to a lane multiple.
    B_pad = _round_up(B, 128)
    TB = min(block_b, B_pad)
    # v7x has 2 TensorCores: if everything fits in one tile but the batch is big
    # enough, split into two grid steps so the "parallel" axis can shard.
    if TB == B_pad and B_pad >= 256 and (B_pad // 2) % 128 == 0:
        TB = B_pad // 2
    B_pad = _round_up(B_pad, TB)
    grid = (B_pad // TB,)

    # Packed feature-major input slab: rows [0:OBS_DIM] = obs^T, rows [OBS_DIM:] = eps^T.
    # Padded columns stay zero -> finite garbage that is sliced off below.
    x_t = jnp.zeros((X_ROWS, B_pad), jnp.float32)
    x_t = x_t.at[0:OBS_DIM, 0:B].set(obs.T)
    x_t = x_t.at[OBS_DIM:X_ROWS, 0:B].set(eps.T)

    cost = pl.CostEstimate(
        flops=2 * B_pad * (HIDDEN * OBS_DIM + HIDDEN * HIDDEN + 2 * ACTION_DIM * HIDDEN),
        transcendentals=4 * B_pad * ACTION_DIM,
        bytes_accessed=(x_t.size * 4 + w_blob.size * 2 + b_blob.size * 4
                        + OUT_ROWS * B_pad * 4),
    )

    out = pl.pallas_call(
        policy_kernel,
        grid=grid,
        in_specs=[
            pl.BlockSpec((X_ROWS, TB), lambda i: (0, i)),         # obs+eps: tiled over batch
            pl.BlockSpec((W_T_ROWS, W_T_COLS), lambda i: (0, 0)),  # weights: VMEM-resident
            pl.BlockSpec((W_T_ROWS, 1), lambda i: (0, 0)),         # biases:  VMEM-resident
        ],
        out_specs=pl.BlockSpec((OUT_ROWS, TB), lambda i: (0, i)),  # action+logprob packed
        out_shape=jax.ShapeDtypeStruct((OUT_ROWS, B_pad), jnp.float32),
        compiler_params=pltpu.CompilerParams(
            dimension_semantics=("parallel",),
            vmem_limit_bytes=32 * 1024 * 1024,
        ),
        cost_estimate=cost,
    )(x_t, w_blob, b_blob)

    action = out[0:ACTION_DIM, 0:B].T          # (B, ACTION_DIM)
    log_prob = out[ACTION_DIM, 0:B]            # (B,)
    return action, log_prob


def _init_params(key):
    ks = jax.random.split(key, 4)
    scale = lambda fan_in: 1.0 / np.sqrt(fan_in)
    return {
        "w1": jax.random.normal(ks[0], (OBS_DIM, HIDDEN), jnp.float32) * scale(OBS_DIM),
        "b1": jnp.zeros((1, HIDDEN), jnp.float32),
        "w2": jax.random.normal(ks[1], (HIDDEN, HIDDEN), jnp.float32) * scale(HIDDEN),
        "b2": jnp.zeros((1, HIDDEN), jnp.float32),
        "wmu": jax.random.normal(ks[2], (HIDDEN, ACTION_DIM), jnp.float32) * scale(HIDDEN),
        "bmu": jnp.zeros((1, ACTION_DIM), jnp.float32),
        "wls": jax.random.normal(ks[3], (HIDDEN, ACTION_DIM), jnp.float32) * scale(HIDDEN),
        "bls": jnp.zeros((1, ACTION_DIM), jnp.float32),
    }


def _reference(obs, params, eps):
    """Pure-JAX reference mirroring the kernel's bf16 MXU operands, but using the
    straightforward tanh / softplus formulation from the PyTorch module."""
    bf = jnp.bfloat16
    f32 = jnp.float32
    h1 = jnp.maximum(jnp.dot(obs.astype(bf), params["w1"].astype(bf),
                             preferred_element_type=f32) + params["b1"], 0.0)
    h2 = jnp.maximum(jnp.dot(h1.astype(bf), params["w2"].astype(bf),
                             preferred_element_type=f32) + params["b2"], 0.0)
    mu = jnp.dot(h2.astype(bf), params["wmu"].astype(bf),
                 preferred_element_type=f32) + params["bmu"]
    log_sigma = jnp.dot(h2.astype(bf), params["wls"].astype(bf),
                        preferred_element_type=f32) + params["bls"]
    sigma = jnp.exp(log_sigma)
    a_pre = mu + sigma * eps
    logp = jnp.sum(-0.5 * eps * eps - log_sigma - 0.5 * LOG_2PI, axis=-1)
    action = MAX_ACTION_RANGE * jnp.tanh(a_pre)
    corr = LOG_MAX_RANGE + 2.0 * jnp.sum(
        LOG_2 - a_pre - jax.nn.softplus(-2.0 * a_pre), axis=-1)
    return action, logp - corr


if __name__ == "__main__":
    key = jax.random.PRNGKey(0)
    k_param, k_obs, k_eps = jax.random.split(key, 3)

    B = 8
    params = _init_params(k_param)
    obs = jax.random.normal(k_obs, (B, OBS_DIM), jnp.float32)
    eps = jax.random.normal(k_eps, (B, ACTION_DIM), jnp.float32)  # rsample noise

    w_blob, b_blob = pack_params(params)
    action, log_prob = policy_forward(obs, w_blob, b_blob, eps)
    jax.block_until_ready((action, log_prob))

    ref_action, ref_logp = _reference(obs, params, eps)
    # Tolerance covers bf16 MXU operands + the EUP approx-reciprocal in tanh.
    assert np.allclose(np.asarray(action), np.asarray(ref_action), atol=2e-3, rtol=2e-3)
    assert np.allclose(np.asarray(log_prob), np.asarray(ref_logp), atol=2e-3, rtol=2e-3)

    # TODO(synk): PyTorch `nan_hook` (debug NaN logging) and the returned Distribution
    # object have no clean Pallas equivalent; eps could be generated in-kernel with
    # pltpu.prng_* but is kept as an explicit input for determinism.
    print("KERNEL_OK")
</pallas_src>

<mosaic_0001>
module attributes {stable_mosaic.version = 11 : i64} {
  func.func @policy_kernel(%arg0: i32, %arg1: memref<36x128xf32, #tpu.memory_space<vmem>>, %arg2: memref<72x32xbf16, #tpu.memory_space<vmem>>, %arg3: memref<72x1xf32, #tpu.memory_space<vmem>>, %arg4: memref<5x128xf32, #tpu.memory_space<vmem>>) attributes {dimension_semantics = [#tpu.dimension_semantics<parallel>], iteration_bounds = array<i64: 1>, scalar_prefetch = 0 : i64, scratch_operands = 0 : i64, tpu.core_type = #tpu.core_type<tc>, window_params = [{transform_indices = @transform_0, window_bounds = array<i64: 36, 128>}, {pipeline_mode = #tpu.pipeline_mode<synchronous>, transform_indices = @transform_1, window_bounds = array<i64: 72, 32>}, {pipeline_mode = #tpu.pipeline_mode<synchronous>, transform_indices = @transform_2, window_bounds = array<i64: 72, 1>}, {transform_indices = @transform_3, window_bounds = array<i64: 5, 128>}]} {
    %c0 = arith.constant 0 : index
    %c0_0 = arith.constant 0 : index
    %0 = vector.load %arg2[%c0, %c0_0] : memref<72x32xbf16, #tpu.memory_space<vmem>>, vector<32x32xbf16>
    %c32 = arith.constant 32 : index
    %c0_1 = arith.constant 0 : index
    %1 = vector.load %arg2[%c32, %c0_1] : memref<72x32xbf16, #tpu.memory_space<vmem>>, vector<32x32xbf16>
    %c64 = arith.constant 64 : index
    %c0_2 = arith.constant 0 : index
    %2 = vector.load %arg2[%c64, %c0_2] : memref<72x32xbf16, #tpu.memory_space<vmem>>, vector<8x32xbf16>
    %c0_3 = arith.constant 0 : index
    %c0_4 = arith.constant 0 : index
    %3 = vector.load %arg3[%c0_3, %c0_4] : memref<72x1xf32, #tpu.memory_space<vmem>>, vector<32x1xf32>
    %c32_5 = arith.constant 32 : index
    %c0_6 = arith.constant 0 : index
    %4 = vector.load %arg3[%c32_5, %c0_6] : memref<72x1xf32, #tpu.memory_space<vmem>>, vector<32x1xf32>
    %c64_7 = arith.constant 64 : index
    %c0_8 = arith.constant 0 : index
    %5 = vector.load %arg3[%c64_7, %c0_8] : memref<72x1xf32, #tpu.memory_space<vmem>>, vector<8x1xf32>
    %c0_9 = arith.constant 0 : index
    %c0_10 = arith.constant 0 : index
    %6 = vector.load %arg1[%c0_9, %c0_10] : memref<36x128xf32, #tpu.memory_space<vmem>>, vector<32x128xf32>
    %7 = arith.truncf %6 : vector<32x128xf32> to vector<32x128xbf16>
    %c32_11 = arith.constant 32 : index
    %c0_12 = arith.constant 0 : index
    %8 = vector.load %arg1[%c32_11, %c0_12] : memref<36x128xf32, #tpu.memory_space<vmem>>, vector<4x128xf32>
    %cst = arith.constant dense<0.000000e+00> : vector<32x128xf32>
    %9 = tpu.matmul %0, %7, %cst {dimension_numbers = #tpu.dot_dimension_numbers<[1], [0], [0], [1], [0, 0, 1, 1], [], []>} : vector<32x32xbf16>, vector<32x128xbf16>, vector<32x128xf32> -> vector<32x128xf32>
    %10 = vector.broadcast %3 : vector<32x1xf32> to vector<32x128xf32>
    %11 = arith.addf %9, %10 : vector<32x128xf32>
    %cst_13 = arith.constant 0.000000e+00 : f32
    %12 = vector.broadcast %cst_13 : f32 to vector<32x128xf32>
    %13 = arith.maximumf %11, %12 : vector<32x128xf32>
    %14 = arith.truncf %13 : vector<32x128xf32> to vector<32x128xbf16>
    %cst_14 = arith.constant dense<0.000000e+00> : vector<32x128xf32>
    %15 = tpu.matmul %1, %14, %cst_14 {dimension_numbers = #tpu.dot_dimension_numbers<[1], [0], [0], [1], [0, 0, 1, 1], [], []>} : vector<32x32xbf16>, vector<32x128xbf16>, vector<32x128xf32> -> vector<32x128xf32>
    %16 = vector.broadcast %4 : vector<32x1xf32> to vector<32x128xf32>
    %17 = arith.addf %15, %16 : vector<32x128xf32>
    %cst_15 = arith.constant 0.000000e+00 : f32
    %18 = vector.broadcast %cst_15 : f32 to vector<32x128xf32>
    %19 = arith.maximumf %17, %18 : vector<32x128xf32>
    %20 = arith.truncf %19 : vector<32x128xf32> to vector<32x128xbf16>
    %cst_16 = arith.constant dense<0.000000e+00> : vector<8x128xf32>
    %21 = tpu.matmul %2, %20, %cst_16 {dimension_numbers = #tpu.dot_dimension_numbers<[1], [0], [0], [1], [0, 0, 1, 1], [], []>} : vector<8x32xbf16>, vector<32x128xbf16>, vector<8x128xf32> -> vector<8x128xf32>
    %22 = vector.broadcast %5 : vector<8x1xf32> to vector<8x128xf32>
    %23 = arith.addf %21, %22 : vector<8x128xf32>
    %24 = vector.extract_strided_slice %23 {offsets = [0, 0], sizes = [4, 128], strides = [1, 1]} : vector<8x128xf32> to vector<4x128xf32>
    %25 = vector.extract_strided_slice %23 {offsets = [4, 0], sizes = [4, 128], strides = [1, 1]} : vector<8x128xf32> to vector<4x128xf32>
    %26 = math.exp %25 : vector<4x128xf32>
    %27 = arith.mulf %26, %8 : vector<4x128xf32>
    %28 = arith.addf %24, %27 : vector<4x128xf32>
    %29 = math.absf %28 : vector<4x128xf32>
    %cst_17 = arith.constant -2.000000e+00 : f32
    %30 = vector.broadcast %cst_17 : f32 to vector<4x128xf32>
    %31 = arith.mulf %30, %29 : vector<4x128xf32>
    %32 = math.exp %31 : vector<4x128xf32>
    %cst_18 = arith.constant 1.000000e+00 : f32
    %33 = vector.broadcast %cst_18 : f32 to vector<4x128xf32>
    %34 = arith.subf %33, %32 : vector<4x128xf32>
    %cst_19 = arith.constant 1.000000e+00 : f32
    %35 = vector.broadcast %cst_19 : f32 to vector<4x128xf32>
    %36 = arith.addf %35, %32 : vector<4x128xf32>
    %37 = tpu.reciprocal %36 {approx = true} : vector<4x128xf32> -> vector<4x128xf32>
    %38 = arith.mulf %34, %37 : vector<4x128xf32>
    %cst_20 = arith.constant 0.000000e+00 : f32
    %39 = vector.broadcast %cst_20 : f32 to vector<4x128xf32>
    %40 = arith.cmpf oge, %28, %39 : vector<4x128xf32>
    %cst_21 = arith.constant 0.000000e+00 : f32
    %41 = vector.broadcast %cst_21 : f32 to vector<4x128xf32>
    %42 = arith.subf %41, %38 : vector<4x128xf32>
    %43 = arith.select %40, %38, %42 : vector<4x128xi1>, vector<4x128xf32>
    %cst_22 = arith.constant 1.000000e+00 : f32
    %44 = vector.broadcast %cst_22 : f32 to vector<4x128xf32>
    %45 = arith.mulf %44, %43 : vector<4x128xf32>
    %cst_23 = arith.constant -5.000000e-01 : f32
    %46 = vector.broadcast %cst_23 : f32 to vector<4x128xf32>
    %47 = arith.mulf %46, %8 : vector<4x128xf32>
    %48 = arith.mulf %47, %8 : vector<4x128xf32>
    %49 = arith.subf %48, %25 : vector<4x128xf32>
    %50 = math.log1p %32 : vector<4x128xf32>
    %51 = arith.addf %29, %50 : vector<4x128xf32>
    %cst_24 = arith.constant 2.000000e+00 : f32
    %52 = vector.broadcast %cst_24 : f32 to vector<4x128xf32>
    %53 = arith.mulf %52, %51 : vector<4x128xf32>
    %54 = arith.addf %49, %53 : vector<4x128xf32>
    %cst_25 = arith.constant dense<0.000000e+00> : vector<128xf32>
    %55 = vector.multi_reduction <add>, %54, %cst_25 [0] : vector<4x128xf32> to vector<128xf32>
    %56 = vector.shape_cast %55 : vector<128xf32> to vector<1x128xf32>
    %cst_26 = arith.constant -9.220932 : f32
    %57 = vector.broadcast %cst_26 : f32 to vector<1x128xf32>
    %58 = arith.addf %56, %57 : vector<1x128xf32>
    %c0_27 = arith.constant 0 : index
    %c0_28 = arith.constant 0 : index
    %59 = vector.load %arg4[%c0_27, %c0_28] : memref<5x128xf32, #tpu.memory_space<vmem>>, vector<4x128xf32>
    tpu.vector_store %arg4[%c0_27, %c0_28], %45 {strides = array<i32>} : memref<5x128xf32, #tpu.memory_space<vmem>>, vector<4x128xf32>,
    %c4 = arith.constant 4 : index
    %c0_29 = arith.constant 0 : index
    %60 = vector.load %arg4[%c4, %c0_29] : memref<5x128xf32, #tpu.memory_space<vmem>>, vector<1x128xf32>
    tpu.vector_store %arg4[%c4, %c0_29], %58 {strides = array<i32>} : memref<5x128xf32, #tpu.memory_space<vmem>>, vector<1x128xf32>,
    return
  }
  func.func @transform_0(%arg0: i32) -> (i32, i32) {
    %c0_i32 = arith.constant 0 : i32
    %c0_i32_0 = arith.constant 0 : i32
    return %c0_i32, %arg0 : i32, i32
  }
  func.func @transform_1(%arg0: i32) -> (i32, i32) {
    %c0_i32 = arith.constant 0 : i32
    %c0_i32_0 = arith.constant 0 : i32
    %c0_i32_1 = arith.constant 0 : i32
    return %c0_i32, %c0_i32_0 : i32, i32
  }
  func.func @transform_2(%arg0: i32) -> (i32, i32) {
    %c0_i32 = arith.constant 0 : i32
    %c0_i32_0 = arith.constant 0 : i32
    %c0_i32_1 = arith.constant 0 : i32
    return %c0_i32, %c0_i32_0 : i32, i32
  }
  func.func @transform_3(%arg0: i32) -> (i32, i32) {
    %c0_i32 = arith.constant 0 : i32
    %c0_i32_0 = arith.constant 0 : i32
    return %c0_i32, %arg0 : i32, i32
  }
}

</mosaic_0001>

<bundles_post_ra>
// kernel: tpu_custom_call.1
= control target key start
LH: loop header
LB: loop body
LE: loop exit
PB: predicated region body
PF: predicated region fallthrough
CT: control target
= control target key end

     0   :  { %v317_v5 = vmov 0   ;;  %s404_s0 = inlined_call_operand.vmem [shape: f32[36,128], index: 0, kind: input, shape index: {}]   ;;  %s405_s1 = inlined_call_operand.vmem [shape: bf16[72,32], index: 1, kind: input, shape index: {}]   ;;  %s406_s2 = inlined_call_operand.vmem [shape: f32[72,1], index: 2, kind: input, shape index: {}]   ;;  %s407_s3 = inlined_call_operand.hbm [shape: f32[5,128], index: 3, kind: output, shape index: {}]  }
   0x1   :  { %v36_v0 = vld [vmem:[%s404_s0 + $0x10] sm:$0xff]  ;;  %v37_v1 = vld [vmem:[%s404_s0 + $0x18] sm:$0xff]  ;;  %v34_v2 = vld [vmem:[%s404_s0] sm:$0xff]  ;;  %280 = vset.pattern.permute.xlu0 %v317_v5  ;;  %281 = vset.pattern.permute.xlu1 %v317_v5 }
   0x2   :  { %v39_v3 = vpack.c.bf16 %v37_v1, %v36_v0  ;;  %v35_v4 = vld [vmem:[%s404_s0 + $0x8] sm:$0xff]  ;;  %v27_v6 = vld [vmem:[%s406_s2 + $0x10] sm:$0xff]  ;;  %v25_v7 = vld [vmem:[%s406_s2] sm:$0xff]  ;;  %282 = vset.pattern.permute.xlu2 %v317_v5 }
   0x3   :  { %53 = vperm.xlu0 %280, %v27_v6   ;;  %v38_v8 = vpack.c.bf16 %v35_v4, %v34_v2  ;;  %43 = vperm.xlu1 %281, %v25_v7  }
   0x4   :  { %276 = vmatpush.bf16.msra.mxu3 %v39_v3  ;;  %84 = vmatpush.bf16.msra.mxu0 %v39_v3 }
   0x5   :  { %8 = vsyncpa [#allocation3], 0  ;;  %v273_v9 = vld [vmem:[%s405_s1 + $0x8] sm:$0xff]  ;;  %v272_v10 = vld [vmem:[%s405_s1] sm:$0xff]  ;;  %vm71_vm0 = vcmask 261120   ;;  %vm224_vm3 = vcmask 1043456  }
   0x6   :  { %v28_v11 = vld [vmem:[%s406_s2 + $0x18] sm:$0xff]  ;;  %v26_v12 = vld [vmem:[%s406_s2 + $0x8] sm:$0xff]  ;;  %v29_v13 = vld [vmem:[%s406_s2 + $0x20] sm:$0xff]  ;;  %s242_s24 = sshll.u32 %s407_s3, 4  ;;  %s243_s24 = int_to_ptr.hbm [resolvable:$true] %s242_s24 }
   0x7   :  { %v30_v14 = vld [vmem:[%s406_s2 + $0x28] sm:$0xff]  ;;  %v31_v20 = vld [vmem:[%s406_s2 + $0x30] sm:$0xff]  ;;  %v32_v30 = vld [vmem:[%s406_s2 + $0x38] sm:$0xff] }
   0x8   :  { %277 = vmatpush.bf16.msra.mxu3 %v38_v8  ;;  %85 = vmatpush.bf16.msra.mxu0 %v38_v8  ;;  %v274_v35 = vld [vmem:[%s405_s1 + $0x10] sm:$0xff]  ;;  %v33_v36 = vld [vmem:[%s406_s2 + $0x40] sm:$0xff]  ;;  %v275_v37 = vld [vmem:[%s405_s1 + $0x18] sm:$0xff] }
   0x9   :  { %115 = vperm.xlu2 %282, %v31_v20   ;;  %v24_v56 = vld [vmem:[%s405_s1 + $0x20] sm:$0xf] }
   0xa   :  { %v40_v61 = vld [vmem:[%s404_s0 + $0x20] sm:$0xf]  ;;  %s318_s0 = smov [#allocation2]  }
   0xb   :  { %260 = vmatmul.msk.bf16.vlgmr.msra.gmra.mxu3 %vm71_vm0, %v273_v9  ;;  %259 = vmatmul.msk.bf16.vlgmr.msra.gmra.mxu0 %vm71_vm0, %v272_v10  ;;  %v188_v62 = vrot.slane %v40_v61, 4  ;;  %s240_s1 = sshll.u32 %s318_s0, 4  ;;  %s241_s1 = int_to_ptr.vmem [resolvable:$true] %s240_s1 }
   0xc   :  { %58 = vperm.xlu0 %280, %v28_v11   ;;  %48 = vperm.xlu1 %281, %v26_v12   ;;  %v206_v11 = vmul.f32 -0.5, %v40_v61 }
  0x11   :  { %120 = vperm.xlu2 %282, %v32_v30  }
  0x14   :  { %105 = vperm.xlu0 %280, %v29_v13   ;;  %110 = vperm.xlu1 %281, %v30_v14  }
  0x19   :  { %166 = vperm.xlu2 %282, %v33_v36  }
  0x63   :  { %v116_v40 = vpop.permute.xlu2 %115 }
  0x6b   :  { %v121_v44 = vpop.permute.xlu2 %120 }
  0x73   :  { %v167_v57 = vpop.permute.xlu2 %166 }
  0x75   :  { %v54_v16 = vpop.permute.xlu0 %53  ;;  %v44_v17 = vpop.permute.xlu1 %43 }
  0x7e   :  { %v59_v21 = vpop.permute.xlu0 %58  ;;  %v49_v23 = vpop.permute.xlu1 %48 }
  0x86   :  { %v111_v42 = vpop.permute.xlu1 %110  ;;  %v106_v48 = vpop.permute.xlu0 %105 }
  0x88   :  { %v87_v15 = vpop.f32.mrf.mxu0 }
  0x89   :  { %v88_v25 = vadd.f32 %v87_v15, %v44_v17 }
  0x8b   :  { %v97_v31 = vmax.f32 %v88_v25, 0.0 }
  0x8e   :  { %v92_v18 = vpop.f32.mrf.mxu3 }
  0x8f   :  { %v93_v22 = vadd.f32 %v92_v18, %v54_v16  ;;  %v207_v18 = vmul.f32 %v206_v11, %v40_v61 }
  0x90   :  { %v89_v19 = vpop.f32.mrf.mxu0 }
  0x91   :  { %v90_v26 = vadd.f32 %v89_v19, %v49_v23  ;;  %v99_v28 = vmax.f32 %v93_v22, 0.0 }
  0x93   :  { %v98_v32 = vmax.f32 %v90_v26, 0.0 }
  0x95   :  { %v101_v34 = vpack.c.bf16 %v98_v32, %v97_v31 }
  0x96   :  { %v94_v24 = vpop.f32.mrf.mxu3 }
  0x97   :  { %v95_v27 = vadd.f32 %v94_v24, %v59_v21 }
  0x99   :  { %v100_v29 = vmax.f32 %v95_v27, 0.0 }
  0x9b   :  { %v102_v33 = vpack.c.bf16 %v100_v29, %v99_v28 }
  0x9d   :  { %145 = vmatpush.bf16.msra.mxu1 %v102_v33 }
  0xa1   :  { %146 = vmatpush.bf16.msra.mxu1 %v101_v34 }
  0xa4   :  { %269 = vmatmul.msk.bf16.vlgmr.msra.gmra.mxu1 %vm71_vm0, %v274_v35 }
  0xb4   :  { %270 = vmatmul.msk.bf16.gmra.mxu1 %vm71_vm0, %v275_v37 }
 0x121   :  { %v148_v38 = vpop.f32.mrf.mxu1 }
 0x122   :  { %v149_v49 = vadd.f32 %v148_v38, %v106_v48 }
 0x124   :  { %v158_v54 = vmax.f32 %v149_v49, 0.0 }
 0x129   :  { %v150_v39 = vpop.f32.mrf.mxu1 }
 0x12a   :  { %v151_v46 = vadd.f32 %v150_v39, %v111_v42 }
 0x12c   :  { %v159_v52 = vmax.f32 %v151_v46, 0.0 }
 0x12e   :  { %v162_v55 = vpack.c.bf16 %v159_v52, %v158_v54 }
 0x131   :  { %v153_v41 = vpop.f32.mrf.mxu1 }
 0x132   :  { %v154_v43 = vadd.f32 %v153_v41, %v116_v40 }
 0x134   :  { %v160_v50 = vmax.f32 %v154_v43, 0.0 }
 0x139   :  { %v155_v45 = vpop.f32.mrf.mxu1 }
 0x13a   :  { %v156_v47 = vadd.f32 %v155_v45, %v121_v44 }
 0x13c   :  { %v161_v51 = vmax.f32 %v156_v47, 0.0 }
 0x13e   :  { %v163_v53 = vpack.c.bf16 %v161_v51, %v160_v50 }
 0x140   :  { %178 = vmatpush.bf16.msra.mxu2 %v163_v53 }
 0x144   :  { %179 = vmatpush.bf16.msra.mxu2 %v162_v55 }
 0x147   :  { %271 = vmatmul.msk.bf16.vlgmr.msra.gmra.mxu2 %vm71_vm0, %v24_v56 }
 0x1ca   :  { %v181_v58 = vpop.f32.mrf.mxu2 }
 0x1cb   :  { %v182_v59 = vadd.f32 %v181_v58, %v167_v57 }
 0x1cd   :  { %v185_v60 = vmul.f32 1.442695, %v182_v59  ;;  %v209_v19 = vrot.slane %v182_v59, 4 }
 0x1cf   :  { %283 = vpow2.f32 %v185_v60  ;;  %v211_v24 = vsub.f32 %v207_v18, %v209_v19 }
 0x1d2   :  { %v183_v63 = vpop.f32.mrf.mxu2 }
 0x1d5   :  { %v284_v0 = vpop.eup %283 }
 0x1d6   :  { %v190_v1 = vmul.f32 %v284_v0, %v188_v62 }
 0x1d8   :  { %v192_v2 = vrot.slane %v190_v1, 4 }
 0x1da   :  { %v194_v3 = vadd.f32 %v192_v2, %v182_v59 }
 0x1dc   :  { %v195_v4 = vand.u32 2147483647, %v194_v3  ;;  %vm203_vm2 = vcmp.ge.f32.partialorder %v194_v3, 0.0 }
 0x1de   :  { %v196_v5 = vmul.f32 -2.0, %v195_v4 }
 0x1e0   :  { %v197_v6 = vmul.f32 1.442695, %v196_v5 }
 0x1e2   :  { %285 = vpow2.f32 %v197_v6 }
 0x1e8   :  { %v286_v7 = vpop.eup %285 }
 0x1e9   :  { %v200_v8 = vadd.f32 1.0, %v286_v7  ;;  %v215_v9 = vmul.f32 -0.5, %v286_v7  ;;  %v218_v12 = vand.u32 2147483647, %v286_v7  ;;  %v199_v14 = vsub.f32 1.0, %v286_v7 }
 0x1eb   :  { %287 = vlog2.f32 %v200_v8  ;;  %v216_v10 = vadd.f32 1.0, %v215_v9  ;;  %vm219_vm1 = vcmp.lt.f32.partialorder %v218_v12, 0.0004427343 }
 0x1ec   :  { %289 = vrcp.f32 %v200_v8 }
 0x1ed   :  { %v217_v17 = vmul.f32 %v286_v7, %v216_v10 }
 0x1f1   :  { %v288_v13 = vpop.eup %287 }
 0x1f2   :  { %v290_v15 = vpop.eup %289  ;;  %v214_v16 = vmul.f32 0.6931472, %v288_v13 }
 0x1f3   :  { %v202_v20 = vmul.f32 %v290_v15, %v199_v14 }
 0x1f4   :  { %v220_v21 = vsel %vm219_vm1, %v217_v17, %v214_v16 }
 0x1f5   :  { %v221_v22 = vadd.f32 %v220_v21, %v195_v4  ;;  %v204_v23 = vsub.f32 0.0, %v202_v20 }
 0x1f7   :  { %v222_v25 = vmul.f32 2.0, %v221_v22  ;;  %v205_v26 = vsel %vm203_vm2, %v202_v20, %v204_v23 }
 0x1f8   :  { %233 = vst [vmem:[#allocation2] sm:$0xf] %v205_v26 }
 0x1f9   :  { %v223_v27 = vadd.f32 %v222_v25, %v211_v24 }
 0x1fb   :  { %v225_v28 = vsel %vm224_vm3, %v223_v27, 0.0 }
 0x1fc   :  { %v226_v29 = vrot.slane %v225_v28, 4 }
 0x1fe   :  { %v227_v30 = vadd.f32 %v226_v29, %v225_v28 }
 0x200   :  { %v228_v31 = vrot.slane %v227_v30, 2 }
 0x202   :  { %v229_v32 = vadd.f32 %v228_v31, %v227_v30 }
 0x204   :  { %v230_v33 = vrot.slane %v229_v32, 1 }
 0x206   :  { %v231_v34 = vadd.f32 %v230_v33, %v229_v32 }
 0x208   :  { %v232_v35 = vadd.f32 -9.220932, %v231_v34 }
 0x20a   :  { %234 = vst [vmem:[#allocation2 + $0x4] sm:$0x1] %v232_v35 }
 0x20b   :  { %245 = dma.vmem_to_hbm [thread:$0]  %s241_s1, 128, %s243_s24, [#allocation3]  }
 0x20c   :  { %315 = dma.done.wait [#allocation3], 128  }
 0x20d   :  { %316 = vsyncadd [#allocation3], 4294967168 }
 0x20e   :  { %250 = vsyncpa [#allocation3], 1 }

</bundles_post_ra>
